<compile_context>
chip_gen: v7x
topology: tpu7x:2x2x1
jax: 0.10.0
libtpu: 0.0.40
codegen_flags: <defaults>
</compile_context>

<pallas_src>
import jax
import jax.numpy as jnp
from jax.experimental import pallas as pl
from jax.experimental.pallas import tpu as pltpu


def _scale_exp_kernel(scale_ref, x_ref, o_ref):
    # scale_ref: (1,) f32 in SMEM; x_ref / o_ref: (block_rows, C) tiles in VMEM
    s = scale_ref[0]
    xv = x_ref[...]
    # Compute in f32 (exact for f32 inputs; in-kernel upcast for low-precision inputs keeps
    # HBM traffic at native width), write back in the output's native dtype.
    o_ref[...] = jnp.exp(xv.astype(jnp.float32) * s).astype(o_ref.dtype)


def scale_exp(x, scale, *, lanes=1024, block_rows=512):
    """y = exp(x * scale). x: arbitrary-shape array; scale: (1,) float32.

    Returns an array with the same shape and dtype as x.
    """
    orig_shape = x.shape
    orig_dtype = x.dtype
    total = int(x.size)

    # ---- pick a lane-dense slab layout --------------------------------------
    C = lanes
    while C > 128 and total <= C * 8:
        C //= 2  # shrink lane width for tiny inputs to limit padding waste (stays mult. of 128)

    rows_needed = -(-total // C)                        # ceil(total / C)
    rows_8 = ((rows_needed + 7) // 8) * 8               # sublane (8) alignment
    br = min(block_rows, rows_8)                        # multiple of 8 by construction
    rows_pad = ((rows_needed + br - 1) // br) * br      # grid alignment (rows_pad % br == 0)
    pad_elems = rows_pad * C - total

    flat = x.reshape(-1)
    if pad_elems:
        flat = jnp.pad(flat, (0, pad_elems))
    x2d = flat.reshape(rows_pad, C)

    scale = jnp.asarray(scale, dtype=jnp.float32).reshape(1)

    out2d = pl.pallas_call(
        _scale_exp_kernel,
        out_shape=jax.ShapeDtypeStruct((rows_pad, C), orig_dtype),
        grid_spec=pltpu.PrefetchScalarGridSpec(
            num_scalar_prefetch=0,
            grid=(rows_pad // br,),
            in_specs=[
                pl.BlockSpec(memory_space=pltpu.SMEM),         # scale scalar (1,) in SMEM
                pl.BlockSpec((br, C), lambda i: (i, 0)),       # lane-dense multi-MiB x tile
            ],
            out_specs=pl.BlockSpec((br, C), lambda i: (i, 0)),
        ),
        compiler_params=pltpu.CompilerParams(
            dimension_semantics=("parallel",),                 # mem-bound; shard across TCs
            vmem_limit_bytes=32 * 1024 * 1024,                 # safe on v5e/v6e/v7x
        ),
    )(scale, x2d)

    out = out2d.reshape(-1)
    if pad_elems:
        out = out[:total]
    return out.reshape(orig_shape).astype(orig_dtype)


if __name__ == "__main__":
    key = jax.random.PRNGKey(0)

    # Parameter: nn.Parameter(torch.tensor([1.0])) -> deterministic init_value=1.0
    scale = jnp.array([1.0], dtype=jnp.float32)

    # Primary (small) test shape consistent with the module: NCHW
    x = jax.random.normal(key, (2, 4, 16, 16), dtype=jnp.float32)
    y = scale_exp(x, scale)
    jax.block_until_ready(y)
    y_ref = jnp.exp(x * scale[0])
    assert y.shape == x.shape and y.dtype == x.dtype
    assert jnp.allclose(y, y_ref, atol=1e-5, rtol=1e-5)

    # Exercise the padding path (non-power-of-2 spatial sizes, as in real FCOS feature maps)
    k1, k2 = jax.random.split(key)
    x2 = jax.random.normal(k1, (2, 8, 50, 67), dtype=jnp.float32)
    y2 = scale_exp(x2, scale)
    jax.block_until_ready(y2)
    assert jnp.allclose(y2, jnp.exp(x2 * scale[0]), atol=1e-5, rtol=1e-5)

    # Exercise the multi-step grid path (> one 512-row block)
    x3 = jax.random.normal(k2, (4, 64, 64, 64), dtype=jnp.float32)
    y3 = scale_exp(x3, scale)
    jax.block_until_ready(y3)
    assert jnp.allclose(y3, jnp.exp(x3 * scale[0]), atol=1e-5, rtol=1e-5)

    print("KERNEL_OK")
</pallas_src>

<mosaic_0001>
module attributes {stable_mosaic.version = 11 : i64} {
  func.func @_scale_exp_kernel(%arg0: i32, %arg1: memref<1xf32, #tpu.memory_space<smem>>, %arg2: memref<16x128xf32, #tpu.memory_space<vmem>>, %arg3: memref<16x128xf32, #tpu.memory_space<vmem>>) attributes {dimension_semantics = [#tpu.dimension_semantics<parallel>], iteration_bounds = array<i64: 1>, scalar_prefetch = 0 : i64, scratch_operands = 0 : i64, tpu.core_type = #tpu.core_type<tc>, window_params = [{transform_indices = @transform_0, window_bounds = array<i64: 1>}, {transform_indices = @transform_1, window_bounds = array<i64: 16, 128>}, {transform_indices = @transform_2, window_bounds = array<i64: 16, 128>}]} {
    %c0 = arith.constant 0 : index
    %0 = memref.load %arg1[%c0] : memref<1xf32, #tpu.memory_space<smem>>
    %c0_0 = arith.constant 0 : index
    %c0_1 = arith.constant 0 : index
    %1 = vector.load %arg2[%c0_0, %c0_1] : memref<16x128xf32, #tpu.memory_space<vmem>>, vector<16x128xf32>
    %2 = vector.broadcast %0 : f32 to vector<16x128xf32>
    %3 = arith.mulf %1, %2 : vector<16x128xf32>
    %4 = math.exp %3 : vector<16x128xf32>
    %c0_2 = arith.constant 0 : index
    %c0_3 = arith.constant 0 : index
    %5 = vector.load %arg3[%c0_2, %c0_3] : memref<16x128xf32, #tpu.memory_space<vmem>>, vector<16x128xf32>
    tpu.vector_store %arg3[%c0_2, %c0_3], %4 {strides = array<i32>} : memref<16x128xf32, #tpu.memory_space<vmem>>, vector<16x128xf32>,
    return
  }
  func.func @transform_0(%arg0: i32) -> i32 {
    %c0_i32 = arith.constant 0 : i32
    %c0_i32_0 = arith.constant 0 : i32
    return %c0_i32 : i32
  }
  func.func @transform_1(%arg0: i32) -> (i32, i32) {
    %c0_i32 = arith.constant 0 : i32
    %c0_i32_0 = arith.constant 0 : i32
    return %arg0, %c0_i32 : i32, i32
  }
  func.func @transform_2(%arg0: i32) -> (i32, i32) {
    %c0_i32 = arith.constant 0 : i32
    %c0_i32_0 = arith.constant 0 : i32
    return %arg0, %c0_i32 : i32, i32
  }
}

</mosaic_0001>

<bundles_post_ra>
// kernel: tpu_custom_call.1
= control target key start
LH: loop header
LB: loop body
LE: loop exit
PB: predicated region body
PF: predicated region fallthrough
CT: control target
= control target key end

     0   :  { %8 = vsyncpa [#allocation4], 0  ;;  %s164_s0 = inlined_call_operand.<no memory space> [shape: f32[1], index: 0, kind: input, shape index: {}]   ;;  %s165_s1 = inlined_call_operand.hbm [shape: f32[16,128], index: 1, kind: input, shape index: {}]   ;;  %s166_s2 = inlined_call_operand.hbm [shape: f32[16,128], index: 2, kind: output, shape index: {}]  }
   0x1   :  { %9 = vsyncpa [#allocation5], 0  ;;  %s112_s9 = smov [#allocation3]   ;;  %s64_s13 = scalar_lea.hbm %s165_s1, 256 }
   0x2   :  { %s17_s10 = sshll.u32 %s112_s9, 4  ;;  %p65_p0 = scmp.ne.s32.totalorder %s165_s1, %s64_s13  ;;  %s18_s10 = int_to_ptr.vmem [resolvable:$true] %s17_s10 }
   0x3   :  { %p68_p1 = scmp.lt.u32.totalorder %s64_s13, %s165_s1 }
   0x5   :  { %p70_p2 = pnand %p68_p1, %p65_p0 }
   0x7   :  { %73 = shalt.err (!%p70_p2)
}
   0x8   :  { %s74_s18 = scalar_lea.vmem %s18_s10, 256  ;;  %p79_p4 = scmp.lt.s32.totalorder %s18_s10, %s18_s10 }
   0x9   :  { %p75_p3 = scmp.ne.s32.totalorder %s18_s10, %s74_s18  ;;  %p80_p5 = scmp.lt.s32.totalorder %s74_s18, %s74_s18 }
   0xb   :  { %p81_p6 = por %p80_p5, %p79_p4 }
   0xd   :  { %p82_p7 = pnand %p81_p6, %p75_p3 }
   0xf   :  { %85 = shalt.err (!%p82_p7)
}
  0x10   :  { %s113_s19 = smov 128   ;;  %s114_s20 = smov 8  }
  0x11   :  { %23 = dma.hbm_to_vmem [thread:$0]  %s165_s1, 256, %s18_s10, [#allocation4], %s113_s19, %s113_s19, %s114_s20  }
  0x12   :  { %108 = dma.done.wait [#allocation4], 256  }
  0x13   :  { %109 = vsyncadd [#allocation4], 4294967040  ;;  %v30_v0 = vstv %s164_s0  ;;  %v28_v1 = vld [vmem:[#allocation3] sm:$0xff]  ;;  %v29_v2 = vld [vmem:[#allocation3 + $0x8] sm:$0xff]  ;;  %s115_s25 = smov [#allocation6]  }
  0x14   :  { %v31_v3 = vmul.f32 %v30_v0, %v28_v1  ;;  %v32_v4 = vmul.f32 %v30_v0, %v29_v2  ;;  %s44_s26 = sshll.u32 %s115_s25, 4  ;;  %s45_s26 = int_to_ptr.vmem [resolvable:$true] %s44_s26 }
  0x15   :  { %s86_s1 = scalar_lea.vmem %s45_s26, 256  ;;  %p91_p9 = scmp.lt.s32.totalorder %s45_s26, %s45_s26 }
  0x16   :  { %v33_v5 = vmul.f32 1.442695, %v31_v3  ;;  %v35_v6 = vmul.f32 1.442695, %v32_v4  ;;  %p87_p8 = scmp.ne.s32.totalorder %s45_s26, %s86_s1  ;;  %p92_p10 = scmp.lt.s32.totalorder %s86_s1, %s86_s1 }
  0x18   :  { %60 = vpow2.f32 %v33_v5  ;;  %p93_p11 = por %p92_p10, %p91_p9 }
  0x19   :  { %62 = vpow2.f32 %v35_v6 }
  0x1a   :  { %p94_p12 = pnand %p93_p11, %p87_p8 }
  0x22   :  { %v61_v7 = vpop.eup %60 }
  0x23   :  { %v63_v8 = vpop.eup %62  ;;  %37 = vst [vmem:[#allocation6] sm:$0xff] %v61_v7 }
  0x24   :  { %38 = vst [vmem:[#allocation6 + $0x8] sm:$0xff] %v63_v8 }
  0x25   :  { %97 = shalt.err (!%p94_p12)
}
  0x26   :  { %s98_s28 = scalar_lea.hbm %s166_s2, 256 }
  0x27   :  { %p99_p13 = scmp.ne.s32.totalorder %s166_s2, %s98_s28  ;;  %p102_p0 = scmp.lt.u32.totalorder %s98_s28, %s166_s2 }
  0x29   :  { %p104_p1 = pnand %p102_p0, %p99_p13 }
  0x2b   :  { %107 = shalt.err (!%p104_p1)
}
  0x2c   :  { %50 = dma.vmem_to_hbm [thread:$0]  %s45_s26, 256, %s166_s2, [#allocation5], %s113_s19, %s113_s19, %s114_s20  }
  0x2d   :  { %110 = dma.done.wait [#allocation5], 256  }
  0x2e   :  { %111 = vsyncadd [#allocation5], 4294967040 }
  0x2f   :  { %54 = vsyncpa [#allocation4], 1 }
  0x30   :  { %55 = vsyncpa [#allocation5], 1 }

</bundles_post_ra>
